<compile_context>
chip_gen: v7x
topology: tpu7x:2x2x1
jax: 0.10.0
libtpu: 0.0.40
codegen_flags: <defaults>
</compile_context>

<pallas_src>
import functools

import jax
import jax.numpy as jnp
from jax.experimental import pallas as pl
from jax.experimental.pallas import tpu as pltpu


_MiB = 1024 * 1024
_DEFAULT_BLOCK_TARGET_BYTES = 8 * _MiB   # HBM-streaming sweet spot on v5e/v6e/v7x


def _round_up(x, m):
    return ((x + m - 1) // m) * m


def _tpu_vmem_capacity_bytes():
    try:
        info = pltpu.get_tpu_info()
        v = getattr(info, "vmem_capacity_bytes", None)
        if v:
            return int(v)
    except Exception:
        pass
    return 64 * _MiB          # conservative fallback (v7x per-core physical VMEM)


def _num_tensorcores():
    """Best-effort per-chip TensorCore count (2 on v7x, 1 on v5e/v6e)."""
    try:
        info = pltpu.get_tpu_info()
        for name in ("num_tensorcores", "tensorcores_per_chip", "num_cores_per_chip",
                     "cores_per_chip"):
            v = getattr(info, name, None)
            if isinstance(v, int) and v > 0:
                return v
    except Exception:
        pass
    return 1                  # unknown -> skip the megacore-only tweak (safe direction)


def _choose_tiles(n, c, hw, itemsize, target_bytes, vmem_usable, num_tc):
    """Returns (mode, tn, tc, tk).

    mode == "full":    input block (tn, tc, hw); grid (N/tn, C/tc), both parallel.
    mode == "spatial": input block (1,  c, tk); grid (N, HW/tk), k axis arbitrary.
    """
    sub = max(8, 32 // itemsize)           # sublane multiple: 8 f32, 16 bf16
    row_bytes = hw * itemsize
    plane_bytes = c * row_bytes

    if plane_bytes <= target_bytes:
        # Several samples per block, full (C, H*W) plane each.
        tn = max(1, min(n, target_bytes // max(plane_bytes, 1)))
        mode, tc, tk = "full", c, hw
    elif c >= sub and 2 * sub * row_bytes + 2 * _MiB <= vmem_usable:
        # Channel split: one contiguous (tc, H*W) slab per DMA, no mask / scratch,
        # no reduction axis, and the channel axis is 'parallel'.
        tc = max(sub, (target_bytes // row_bytes) // sub * sub)
        tc = min(tc, c)
        mode, tn, tk = "full", 1, hw
    else:
        # Spatial split fallback (tiny C with huge H*W): 128-aligned chunks, f32
        # running accumulators, masking only on the final chunk.
        tk = max(128, (target_bytes // max(c * itemsize, 1)) // 128 * 128)
        tk = min(tk, hw)
        mode, tn, tc = "spatial", 1, c

    # v7x megacore only: keep >= 2 parallel grid iterations when the work allows it.
    if num_tc >= 2 and mode == "full":
        if pl.cdiv(n, tn) * pl.cdiv(c, tc) < 2:
            if n >= 2:
                tn = pl.cdiv(n, 2)
            elif c >= 2 * sub:
                tc = _round_up(pl.cdiv(c, 2), sub)
    return mode, tn, tc, tk


def _pool_full_kernel(x_ref, avg_ref, max_ref, *, inv_hw):
    # x_ref: (tn, tc, HW)    avg_ref / max_ref: (tn, tc, 1)
    x = x_ref[...]
    s = jnp.sum(x, axis=-1, keepdims=True, dtype=jnp.float32)   # f32 accumulation
    m = jnp.max(x, axis=-1, keepdims=True)                      # stays in input dtype
    avg_ref[...] = (s * jnp.float32(inv_hw)).astype(avg_ref.dtype)
    max_ref[...] = m.astype(max_ref.dtype)


def _pool_spatial_kernel(x_ref, avg_ref, max_ref, sum_sc, max_sc, *, hw, tk, inv_hw):
    # x_ref: (tn, C, tk)   avg_ref/max_ref: (tn, C, 1)   sum_sc/max_sc: (tn, C, 1) f32
    k = pl.program_id(1)
    nk = pl.num_programs(1)

    @pl.when(k == 0)
    def _():
        sum_sc[...] = jnp.zeros_like(sum_sc)
        max_sc[...] = jnp.full_like(max_sc, -jnp.inf)

    x = x_ref[...]

    def _accum(x_sum, x_max):
        sum_sc[...] += jnp.sum(x_sum, axis=-1, keepdims=True, dtype=jnp.float32)
        max_sc[...] = jnp.maximum(
            max_sc[...], jnp.max(x_max, axis=-1, keepdims=True).astype(jnp.float32))

    tail = hw % tk
    if tail:
        # Mask only the final chunk; every other chunk takes the cheap unmasked path.
        @pl.when(k < nk - 1)
        def _():
            _accum(x, x)

        @pl.when(k == nk - 1)
        def _():
            lane = jax.lax.broadcasted_iota(jnp.int32, x.shape, 2)
            valid = lane < tail
            _accum(jnp.where(valid, x, jnp.zeros((), x.dtype)),
                   jnp.where(valid, x, jnp.full((), -jnp.inf, x.dtype)))
    else:
        _accum(x, x)

    @pl.when(k == nk - 1)
    def _():
        avg_ref[...] = (sum_sc[...] * jnp.float32(inv_hw)).astype(avg_ref.dtype)
        max_ref[...] = max_sc[...].astype(max_ref.dtype)


@functools.partial(jax.jit, static_argnames=("how", "flatten", "block_target_bytes"))
def adaptive_concat_pooler(x, how="both", flatten=True, block_target_bytes=None):
    """Pallas equivalent of AdaptiveConcatPooler.forward.

    x: (N, C, H, W) NCHW, floating dtype.
    Returns:
      how == 'both': (N, 2*C) if flatten else (N, 2*C, 1, 1)
      how == 'avg'/'max': (N, C) if flatten else (N, C, 1, 1)
    """
    if how not in ("both", "avg", "max"):
        raise ValueError(f"unknown how={how!r}")
    if not jnp.issubdtype(x.dtype, jnp.floating):
        raise ValueError("adaptive_concat_pooler requires a floating-point input")

    N, C, H, W = x.shape
    HW = H * W
    itemsize = x.dtype.itemsize
    xr = x.reshape(N, C, HW)

    vmem_cap = _tpu_vmem_capacity_bytes()
    vmem_usable = int(vmem_cap * 0.8)
    target = (block_target_bytes if block_target_bytes is not None
              else min(_DEFAULT_BLOCK_TARGET_BYTES, vmem_usable // 3))
    num_tc = _num_tensorcores()

    mode, tn, tc, tk = _choose_tiles(N, C, HW, itemsize, target, vmem_usable, num_tc)

    # Explicit VMEM limit: double-buffered input block + headroom, never below 32 MiB
    # (so we never go under any generation's default scoped limit).
    sub = max(8, 32 // itemsize)
    pad_lane = _round_up(tk if mode == "spatial" else HW, 128)
    pad_sub = _round_up(C if mode == "spatial" else tc, sub)
    block_vmem = tn * pad_sub * pad_lane * itemsize
    vmem_limit = int(min(vmem_usable, max(32 * _MiB, 2 * block_vmem + 4 * _MiB)))

    out_shape = (jax.ShapeDtypeStruct((N, C, 1), x.dtype),
                 jax.ShapeDtypeStruct((N, C, 1), x.dtype))

    if mode == "full":
        grid = (pl.cdiv(N, tn), pl.cdiv(C, tc))
        in_specs = [pl.BlockSpec((tn, tc, HW), lambda i, c: (i, c, 0))]
        out_specs = [pl.BlockSpec((tn, tc, 1), lambda i, c: (i, c, 0)),
                     pl.BlockSpec((tn, tc, 1), lambda i, c: (i, c, 0))]
        scratch = []
        kernel = functools.partial(_pool_full_kernel, inv_hw=1.0 / HW)
        semantics = ("parallel", "parallel")
    else:
        grid = (pl.cdiv(N, tn), pl.cdiv(HW, tk))
        in_specs = [pl.BlockSpec((tn, C, tk), lambda i, k: (i, 0, k))]
        out_specs = [pl.BlockSpec((tn, C, 1), lambda i, k: (i, 0, 0)),
                     pl.BlockSpec((tn, C, 1), lambda i, k: (i, 0, 0))]
        scratch = [pltpu.VMEM((tn, C, 1), jnp.float32),
                   pltpu.VMEM((tn, C, 1), jnp.float32)]
        kernel = functools.partial(_pool_spatial_kernel, hw=HW, tk=tk, inv_hw=1.0 / HW)
        semantics = ("parallel", "arbitrary")
        # TODO(synk): sweep pipeline_mode=pl.Buffered(3) on the input spec for v7x if
        # this strided fallback path ever shows exposed DMA gaps.

    avg, mx = pl.pallas_call(
        kernel,
        out_shape=out_shape,
        grid_spec=pltpu.PrefetchScalarGridSpec(
            num_scalar_prefetch=0,
            grid=grid,
            in_specs=in_specs,
            out_specs=out_specs,
            scratch_shapes=scratch,
        ),
        compiler_params=pltpu.CompilerParams(
            dimension_semantics=semantics,
            vmem_limit_bytes=vmem_limit),
    )(xr)

    avg = avg[..., 0]   # (N, C)
    mx = mx[..., 0]     # (N, C)

    # TODO(synk): for channels-last producers (NHWC with H*W << 128, e.g. 7x7 heads),
    # add a variant that keeps C on the lane axis and reduces over sublanes instead of
    # paying the lane-padding waste of the NCHW layout.

    if how == "both":
        # Matches torch.cat([avg, max], dim=1).flatten(1): avg channels then max channels.
        feats = jnp.concatenate([avg, mx], axis=1)
    elif how == "avg":
        feats = avg
    else:
        feats = mx

    if not flatten:
        feats = feats.reshape(feats.shape[0], feats.shape[1], 1, 1)
    return feats


def _reference(x):
    avg = jnp.mean(x, axis=(2, 3))
    mx = jnp.max(x, axis=(2, 3))
    return jnp.concatenate([avg, mx], axis=1)


if __name__ == "__main__":
    key = jax.random.PRNGKey(0)
    k1, k2, k3 = jax.random.split(key, 3)

    # 1) Small case: whole (C, H*W) plane(s) per block ("full" mode).
    N, C, H, W = 2, 4, 16, 16
    x = jax.random.normal(k1, (N, C, H, W), dtype=jnp.float32)
    out = jax.block_until_ready(adaptive_concat_pooler(x, how="both", flatten=True))
    ref = _reference(x)
    assert out.shape == (N, 2 * C), out.shape
    assert jnp.allclose(out, ref, atol=1e-5, rtol=1e-5), "mismatch vs reference (both)"

    out_avg = jax.block_until_ready(adaptive_concat_pooler(x, how="avg", flatten=True))
    out_max = jax.block_until_ready(adaptive_concat_pooler(x, how="max", flatten=False))
    assert jnp.allclose(out_avg, ref[:, :C], atol=1e-5, rtol=1e-5)
    assert out_max.shape == (N, C, 1, 1)
    assert jnp.allclose(out_max[..., 0, 0], ref[:, C:], atol=1e-5, rtol=1e-5)

    # 2) Channel-split path with a ragged channel edge (C=12, tc=8) via a tiny target.
    x2 = jax.random.normal(k2, (2, 12, 16, 16), dtype=jnp.float32)
    out2 = jax.block_until_ready(
        adaptive_concat_pooler(x2, how="both", flatten=True, block_target_bytes=2048))
    assert jnp.allclose(out2, _reference(x2), atol=1e-5, rtol=1e-5), \
        "mismatch vs reference (channel split)"

    # 3) Spatial-split fallback with a masked tail (C=4 < 8, HW=225, tk=128).
    x3 = jax.random.normal(k3, (2, 4, 15, 15), dtype=jnp.float32)
    out3 = jax.block_until_ready(
        adaptive_concat_pooler(x3, how="both", flatten=True, block_target_bytes=1024))
    assert jnp.allclose(out3, _reference(x3), atol=1e-5, rtol=1e-5), \
        "mismatch vs reference (spatial split)"

    print("KERNEL_OK")
</pallas_src>

<mosaic_0001>
module attributes {stable_mosaic.version = 11 : i64} {
  func.func @_pool_full_kernel(%arg0: i32, %arg1: i32, %arg2: memref<2x4x256xf32, #tpu.memory_space<vmem>>, %arg3: memref<2x4x1xf32, #tpu.memory_space<vmem>>, %arg4: memref<2x4x1xf32, #tpu.memory_space<vmem>>) attributes {dimension_semantics = [#tpu.dimension_semantics<parallel>, #tpu.dimension_semantics<parallel>], iteration_bounds = array<i64: 1, 1>, scalar_prefetch = 0 : i64, scratch_operands = 0 : i64, tpu.core_type = #tpu.core_type<tc>, window_params = [{transform_indices = @transform_0, window_bounds = array<i64: 2, 4, 256>}, {transform_indices = @transform_1, window_bounds = array<i64: 2, 4, 1>}, {transform_indices = @transform_2, window_bounds = array<i64: 2, 4, 1>}]} {
    %c0 = arith.constant 0 : index
    %c0_0 = arith.constant 0 : index
    %c0_1 = arith.constant 0 : index
    %0 = vector.load %arg2[%c0, %c0_0, %c0_1] : memref<2x4x256xf32, #tpu.memory_space<vmem>>, vector<2x4x256xf32>
    %cst = arith.constant dense<0.000000e+00> : vector<2x4xf32>
    %1 = vector.multi_reduction <add>, %0, %cst [2] : vector<2x4x256xf32> to vector<2x4xf32>
    %2 = vector.shape_cast %1 : vector<2x4xf32> to vector<2x4x1xf32>
    %cst_2 = arith.constant dense<0xFF800000> : vector<2x4xf32>
    %3 = vector.multi_reduction <maximumf>, %0, %cst_2 [2] : vector<2x4x256xf32> to vector<2x4xf32>
    %4 = vector.shape_cast %3 : vector<2x4xf32> to vector<2x4x1xf32>
    %cst_3 = arith.constant 3.906250e-03 : f32
    %5 = vector.broadcast %cst_3 : f32 to vector<2x4x1xf32>
    %6 = arith.mulf %2, %5 : vector<2x4x1xf32>
    %c0_4 = arith.constant 0 : index
    %c0_5 = arith.constant 0 : index
    %c0_6 = arith.constant 0 : index
    %7 = vector.load %arg3[%c0_4, %c0_5, %c0_6] : memref<2x4x1xf32, #tpu.memory_space<vmem>>, vector<2x4x1xf32>
    tpu.vector_store %arg3[%c0_4, %c0_5, %c0_6], %6 {strides = array<i32>} : memref<2x4x1xf32, #tpu.memory_space<vmem>>, vector<2x4x1xf32>,
    %c0_7 = arith.constant 0 : index
    %c0_8 = arith.constant 0 : index
    %c0_9 = arith.constant 0 : index
    %8 = vector.load %arg4[%c0_7, %c0_8, %c0_9] : memref<2x4x1xf32, #tpu.memory_space<vmem>>, vector<2x4x1xf32>
    tpu.vector_store %arg4[%c0_7, %c0_8, %c0_9], %4 {strides = array<i32>} : memref<2x4x1xf32, #tpu.memory_space<vmem>>, vector<2x4x1xf32>,
    return
  }
  func.func @transform_0(%arg0: i32, %arg1: i32) -> (i32, i32, i32) {
    %c0_i32 = arith.constant 0 : i32
    %c0_i32_0 = arith.constant 0 : i32
    return %arg0, %arg1, %c0_i32 : i32, i32, i32
  }
  func.func @transform_1(%arg0: i32, %arg1: i32) -> (i32, i32, i32) {
    %c0_i32 = arith.constant 0 : i32
    %c0_i32_0 = arith.constant 0 : i32
    return %arg0, %arg1, %c0_i32 : i32, i32, i32
  }
  func.func @transform_2(%arg0: i32, %arg1: i32) -> (i32, i32, i32) {
    %c0_i32 = arith.constant 0 : i32
    %c0_i32_0 = arith.constant 0 : i32
    return %arg0, %arg1, %c0_i32 : i32, i32, i32
  }
}

</mosaic_0001>

<bundles_post_ra>
// kernel: adaptive_concat_pooler.1
= control target key start
LH: loop header
LB: loop body
LE: loop exit
PB: predicated region body
PF: predicated region fallthrough
CT: control target
= control target key end

     0   :  { %vm18_vm0 = vcmask 1043456   ;;  %vm41_vm1 = vcmask 3072   ;;  %s89_s0 = inlined_call_operand.vmem [shape: f32[2,4,256], index: 0, kind: input, shape index: {}]   ;;  %s90_s2 = inlined_call_operand.vmem [shape: f32[2,4,1], index: 2, kind: output, shape index: {1}]   ;;  %s91_s1 = inlined_call_operand.vmem [shape: f32[2,4,1], index: 1, kind: output, shape index: {0}]  }
   0x1   :  { %v10_v0 = vld [vmem:[%s89_s0] sm:$0xff]  ;;  %v11_v1 = vld [vmem:[%s89_s0 + $0x8] sm:$0xff] }
   0x2   :  { %v14_v2 = vcombine.high %v10_v0, %v10_v0  ;;  %v19_v3 = vsel %vm18_vm0, %v10_v0, 0.0  ;;  %v29_v4 = vsel %vm18_vm0, %v10_v0, -inf  ;;  %v15_v5 = vcombine.high %v11_v1, %v11_v1 }
   0x3   :  { %v24_v6 = vsel %vm18_vm0, %v11_v1, 0.0  ;;  %v34_v7 = vsel %vm18_vm0, %v11_v1, -inf }
   0x4   :  { %v20_v8 = vsel %vm18_vm0, %v14_v2, 0.0  ;;  %v30_v9 = vsel %vm18_vm0, %v14_v2, -inf  ;;  %v25_v10 = vsel %vm18_vm0, %v15_v5, 0.0  ;;  %v35_v11 = vsel %vm18_vm0, %v15_v5, -inf }
   0x5   :  { %v21_v12 = vadd.f32 %v20_v8, %v19_v3  ;;  %v31_v13 = vmax.f32 %v29_v4, %v30_v9  ;;  %v26_v14 = vadd.f32 %v25_v10, %v24_v6  ;;  %v36_v15 = vmax.f32 %v34_v7, %v35_v11 }
   0x7   :  { %22 = vadd.xlane.f32.xlu0 %v21_v12  ;;  %32 = vmax.xlane.f32.xlu1 %v31_v13 }
   0xb   :  { %27 = vadd.xlane.f32.xlu0 %v26_v14  ;;  %37 = vmax.xlane.f32.xlu1 %v36_v15 }
  0x94   :  { %v23_v16 = vpop.xlane.xlu0 %22  ;;  %v33_v17 = vpop.xlane.xlu1 %32 }
  0x95   :  { %v39_v18 = vmul.f32 0.00390625, %v23_v16  ;;  %44 = vst.msk [vmem:[%s90_s2] sm:$0xf] %vm41_vm1, %v33_v17 }
  0x97   :  { %42 = vst.msk [vmem:[%s91_s1] sm:$0xf] %vm41_vm1, %v39_v18 }
  0x98   :  { %v28_v19 = vpop.xlane.xlu0 %27  ;;  %v38_v20 = vpop.xlane.xlu1 %37 }
  0x99   :  { %v40_v21 = vmul.f32 0.00390625, %v28_v19  ;;  %45 = vst.msk [vmem:[%s90_s2 + $0x4] sm:$0xf] %vm41_vm1, %v38_v20 }
  0x9b   :  { %43 = vst.msk [vmem:[%s91_s1 + $0x4] sm:$0xf] %vm41_vm1, %v40_v21 }

</bundles_post_ra>
